<compile_context>
chip_gen: v6e
topology: v6e:2x2x1
jax: 0.10.0
libtpu: 0.0.40
codegen_flags: <defaults>
</compile_context>

<pallas_src>
import math
import random
import functools

import numpy as np
import jax
import jax.numpy as jnp
from jax.experimental import pallas as pl
from jax.experimental.pallas import tpu as pltpu


# ----------------------------------------------------------------------------
# Tiling helpers (blocks sized to fit comfortably in VMEM on v5e/v6e/v7x)
# ----------------------------------------------------------------------------
_MAX_ROW_TILE = 256          # sublane-axis tile (multiple of 8)
_MAX_COL_TILE = 1024         # lane-axis tile (multiple of 128)
_RESAMPLE_VMEM_BUDGET = 6 << 20   # per-block budget; x2 double-buffer stays <32MB


def _row_tile(r):
    return r if (r <= _MAX_ROW_TILE or r % 8 != 0) else _MAX_ROW_TILE


def _col_tile(c):
    return c if (c <= _MAX_COL_TILE or c % 128 != 0) else _MAX_COL_TILE


def _batch_tile(B, tr, L):
    # bytes resident per batch entry in one block: x(f32) + out(f32) + kt(bf16)
    per_b = tr * L * 4 + tr * L * 4 + L * L * 2
    return max(1, min(B, _RESAMPLE_VMEM_BUDGET // max(per_b, 1)))


# ----------------------------------------------------------------------------
# Pallas kernels
# ----------------------------------------------------------------------------
def _resample_kernel(x_ref, kt_ref, o_ref):
    # x: (TB, TR, L) f32, kt: (TB, L, L) bf16 -> o: (TB, TR, L) f32
    x = x_ref[...].astype(jnp.bfloat16)
    o_ref[...] = jnp.einsum("brk,bkl->brl", x, kt_ref[...],
                            preferred_element_type=jnp.float32)


def _make_solarize_kernel(threshold):
    def k(x_ref, o_ref):
        x = x_ref[...]
        o_ref[...] = jnp.where(x >= threshold, 1.0 - x, x)
    return k


def _make_posterize_kernel(bits):
    # float adaptation of uint8 posterize: keep top `bits` bits of round(x*255)
    step = float(2 ** (8 - int(bits)))

    def k(x_ref, o_ref):
        x = x_ref[...]
        q = jnp.floor(x * 255.0)
        o_ref[...] = (jnp.floor(q / step) * step) / 255.0
    return k


def _autocontrast_kernel(x_ref, o_ref):
    # x: (TR, H*W) — per-row (per n,c) min/max stretch in one pass.
    x = x_ref[...]
    mn = jnp.min(x, axis=1, keepdims=True)
    mx = jnp.max(x, axis=1, keepdims=True)
    rng = mx - mn
    safe = jnp.where(rng > 0.0, rng, 1.0)
    stretched = jnp.clip((x - mn) / safe, 0.0, 1.0)
    o_ref[...] = jnp.where(rng > 0.0, stretched, x)


def _make_mix_kernel(width):
    # refs: (x, m0, cw, aug_0..aug_{K-1}, out)
    def k(*refs):
        x_ref, m0_ref, cw_ref = refs[0], refs[1], refs[2]
        aug_refs = refs[3:3 + width]
        o_ref = refs[3 + width]
        mix = m0_ref[...] * x_ref[...]          # (TR,1) * (TR,TC)
        for i in range(width):                  # static unroll
            mix = mix + cw_ref[i] * aug_refs[i][...]
        o_ref[...] = mix
    return k


# ----------------------------------------------------------------------------
# Tiled pallas_call wrappers
# ----------------------------------------------------------------------------
def _run_elementwise_2d(kernel, x2):
    R, C = x2.shape
    tr, tc = _row_tile(R), _col_tile(C)
    spec = pl.BlockSpec((tr, tc), lambda i, j: (i, j))
    return pl.pallas_call(
        kernel,
        out_shape=jax.ShapeDtypeStruct((R, C), jnp.float32),
        grid=(pl.cdiv(R, tr), pl.cdiv(C, tc)),
        in_specs=[spec],
        out_specs=spec,
        compiler_params=pltpu.CompilerParams(
            dimension_semantics=("parallel", "parallel")),
    )(x2)


def _run_elementwise(kernel, img):
    N, C, H, W = img.shape
    out = _run_elementwise_2d(kernel, img.reshape(N * C, H * W))
    return out.reshape(N, C, H, W)


def _autocontrast(img):
    N, C, H, W = img.shape
    x2 = img.reshape(N * C, H * W)
    R, Cols = x2.shape
    tr = R if (R <= 64 or R % 8 != 0) else 64   # full H*W per block, few rows
    spec = pl.BlockSpec((tr, Cols), lambda i: (i, 0))
    out = pl.pallas_call(
        _autocontrast_kernel,
        out_shape=jax.ShapeDtypeStruct((R, Cols), jnp.float32),
        grid=(pl.cdiv(R, tr),),
        in_specs=[spec],
        out_specs=spec,
        compiler_params=pltpu.CompilerParams(dimension_semantics=("parallel",)),
    )(x2)
    return out.reshape(N, C, H, W)


def _batched_resample(x3, kt3):
    # out[b] = x3[b] @ kt3[b];  x3: (B, R, L) f32, kt3: (B, L, L) bf16
    # Batch axis is tiled into the block -> one (or few) grid steps per pass.
    B, R, L = x3.shape
    tr = _row_tile(R)
    tb = _batch_tile(B, tr, L)
    return pl.pallas_call(
        _resample_kernel,
        out_shape=jax.ShapeDtypeStruct((B, R, L), jnp.float32),
        grid=(pl.cdiv(B, tb), pl.cdiv(R, tr)),
        in_specs=[pl.BlockSpec((tb, tr, L), lambda b, i: (b, i, 0)),
                  pl.BlockSpec((tb, L, L), lambda b, i: (b, 0, 0))],
        out_specs=pl.BlockSpec((tb, tr, L), lambda b, i: (b, i, 0)),
        compiler_params=pltpu.CompilerParams(
            dimension_semantics=("parallel", "parallel")),
    )(x3, kt3)


# ----------------------------------------------------------------------------
# Host-side construction of 1-D bilinear resampling weights (cached)
# ----------------------------------------------------------------------------
def _bilinear_1d_weights(L, src):
    """src: (B, L_out) source coords -> (B, L_out, L) f32 bilinear weights
    (zero padding outside [0, L))."""
    Bn, Lo = src.shape
    x0 = np.floor(src)
    f = src - x0
    K = np.zeros((Bn, Lo, L), dtype=np.float32)
    bb = np.repeat(np.arange(Bn), Lo)
    oo = np.tile(np.arange(Lo), Bn)
    for d, wt in ((0, 1.0 - f), (1, f)):
        xi = (x0 + d).astype(np.int64)
        valid = (xi >= 0) & (xi < L)
        np.add.at(K, (bb, oo, np.clip(xi, 0, L - 1).ravel()),
                  (wt * valid).ravel().astype(np.float32))
    return K


@functools.lru_cache(maxsize=None)
def _row_kernel_T(H, W, A, B, C):
    # per-row horizontal resample: src_x(h, w) = A*w + B*h + C
    w_out = np.arange(W, dtype=np.float64)[None, :]
    h_idx = np.arange(H, dtype=np.float64)[:, None]
    K = _bilinear_1d_weights(W, A * w_out + B * h_idx + C)          # (H, W, W)
    return jnp.asarray(np.transpose(K, (0, 2, 1)), jnp.bfloat16)


@functools.lru_cache(maxsize=None)
def _col_kernel_T(H, W, slope, ccoef, icept):
    # per-column vertical resample: src_y(w, h) = slope*h + ccoef*w + icept
    h_out = np.arange(H, dtype=np.float64)[None, :]
    w_idx = np.arange(W, dtype=np.float64)[:, None]
    K = _bilinear_1d_weights(H, slope * h_out + ccoef * w_idx + icept)  # (W,H,H)
    return jnp.asarray(np.transpose(K, (0, 2, 1)), jnp.bfloat16)


# ----------------------------------------------------------------------------
# torchvision-compatible inverse affine matrix + separable two-pass warp
# ----------------------------------------------------------------------------
def _get_inverse_affine_matrix(center, angle, translate, scale, shear):
    rot = math.radians(angle)
    sx = math.radians(shear[0])
    sy = math.radians(shear[1])
    cx, cy = center
    tx, ty = translate
    a = math.cos(rot - sy) / math.cos(sy)
    b = -math.cos(rot - sy) * math.tan(sx) / math.cos(sy) - math.sin(rot)
    c = math.sin(rot - sy) / math.cos(sy)
    d = -math.sin(rot - sy) * math.tan(sx) / math.cos(sy) + math.cos(rot)
    m = [d, -b, 0.0, -c, a, 0.0]
    m = [v / scale for v in m]
    m[2] += m[0] * (-cx - tx) + m[1] * (-cy - ty)
    m[5] += m[3] * (-cx - tx) + m[4] * (-cy - ty)
    m[2] += cx
    m[5] += cy
    return m


_EPS = 1e-9


def _affine_warp(img, matrix):
    """Separable two-pass bilinear inverse warp (vertical, then horizontal).

    Shear/Translate reduce to a single exact 1-D pass; Rotate uses both passes.
    Zero padding outside the image, matching grid_sample zeros padding."""
    N, C, H, W = img.shape
    m0, m1, m2, m3, m4, m5 = matrix
    cx, cy = (W - 1) / 2.0, (H - 1) / 2.0
    # pixel-space inverse map: src_x = A*x + B*y + Cc ; src_y = D*x + E*y + F
    A, B = float(m0), float(m1)
    Cc = float(m2 + cx - m0 * cx - m1 * cy)
    D, E = float(m3), float(m4)
    F = float(m5 + cy - m3 * cx - m4 * cy)

    out = img
    nc = N * C

    # --- pass 1: vertical (per-column y-resample) ----------------------------
    slope = E - D * B / A
    ccoef = D / A
    icept = F - D * Cc / A
    if not (abs(slope - 1.0) < _EPS and abs(ccoef) < _EPS and abs(icept) < _EPS):
        kt = _col_kernel_T(H, W, slope, ccoef, icept)            # (W, H, H) bf16
        xv = jnp.transpose(out.reshape(nc, H, W), (2, 0, 1))     # (W, NC, H)
        yv = _batched_resample(xv, kt)                           # (W, NC, H)
        out = jnp.transpose(yv, (1, 2, 0)).reshape(N, C, H, W)

    # --- pass 2: horizontal (per-row x-resample) ------------------------------
    if not (abs(A - 1.0) < _EPS and abs(B) < _EPS and abs(Cc) < _EPS):
        kt = _row_kernel_T(H, W, A, B, Cc)                       # (H, W, W) bf16
        xh = jnp.transpose(out.reshape(nc, H, W), (1, 0, 2))     # (H, NC, W)
        yh = _batched_resample(xh, kt)                           # (H, NC, W)
        out = jnp.transpose(yh, (1, 0, 2)).reshape(N, C, H, W)

    return out


# ----------------------------------------------------------------------------
# Op dispatch (mirrors _apply_op)
# ----------------------------------------------------------------------------
def _apply_op(img, op_name, magnitude):
    if op_name == "ShearX":
        m = _get_inverse_affine_matrix(
            [0.0, 0.0], 0.0, [0.0, 0.0], 1.0,
            [math.degrees(math.atan(magnitude)), 0.0])
        return _affine_warp(img, m)
    if op_name == "ShearY":
        m = _get_inverse_affine_matrix(
            [0.0, 0.0], 0.0, [0.0, 0.0], 1.0,
            [0.0, math.degrees(math.atan(magnitude))])
        return _affine_warp(img, m)
    if op_name == "TranslateX":
        m = _get_inverse_affine_matrix(
            [0.0, 0.0], 0.0, [float(int(magnitude)), 0.0], 1.0, [0.0, 0.0])
        return _affine_warp(img, m)
    if op_name == "TranslateY":
        m = _get_inverse_affine_matrix(
            [0.0, 0.0], 0.0, [0.0, float(int(magnitude))], 1.0, [0.0, 0.0])
        return _affine_warp(img, m)
    if op_name == "Rotate":
        # F.rotate passes -angle to the inverse matrix builder
        m = _get_inverse_affine_matrix([0.0, 0.0], -magnitude, [0.0, 0.0], 1.0,
                                       [0.0, 0.0])
        return _affine_warp(img, m)
    if op_name == "Solarize":
        # uint8 magnitude space (0..255) adapted to [0,1] float images
        return _run_elementwise(_make_solarize_kernel(magnitude / 255.0), img)
    if op_name == "Posterize":
        return _run_elementwise(_make_posterize_kernel(int(magnitude)), img)
    if op_name == "AutoContrast":
        return _autocontrast(img)
    if op_name == "Equalize":
        # TODO(synk): uint8 per-channel histogram equalization has no clean
        # Pallas equivalent here; treated as identity.
        return img
    if op_name == "Identity":
        return img
    raise ValueError(f"The provided operator {op_name} is not recognized.")


# ----------------------------------------------------------------------------
# AugMix module (JAX / Pallas)
# ----------------------------------------------------------------------------
class AugMixPallas:
    _PARAMETER_MAX = 10

    def __init__(self, severity=3, mixture_width=3, chain_depth=-1, alpha=1.0,
                 all_ops=False, seed=0):
        if not 1 <= severity <= self._PARAMETER_MAX:
            raise ValueError("severity out of range")
        self.severity = severity
        self.mixture_width = mixture_width
        self.chain_depth = chain_depth
        self.alpha = alpha
        self.all_ops = all_ops
        self.seed = seed

    def _augmentation_space(self, num_bins, image_size):
        # NB: faithfully reproduces the (width, height) naming quirk of the
        # reference module; irrelevant for square images.
        s = {
            "ShearX": (np.linspace(0.0, 0.3, num_bins), True),
            "ShearY": (np.linspace(0.0, 0.3, num_bins), True),
            "TranslateX": (np.linspace(0.0, image_size[1] / 3.0, num_bins), True),
            "TranslateY": (np.linspace(0.0, image_size[0] / 3.0, num_bins), True),
            "Rotate": (np.linspace(0.0, 30.0, num_bins), True),
            "Posterize": (4 - np.round(np.arange(num_bins) /
                                       ((num_bins - 1) / 4)).astype(np.int32), False),
            "Solarize": (np.linspace(255.0, 0.0, num_bins), False),
            "AutoContrast": (np.array(0.0), False),
            "Equalize": (np.array(0.0), False),
        }
        if self.all_ops:
            # TODO(synk): Brightness/Color/Contrast/Sharpness kernels not
            # implemented (only sampled when all_ops=True).
            s.update({
                "Brightness": (np.linspace(0.0, 0.9, num_bins), True),
                "Color": (np.linspace(0.0, 0.9, num_bins), True),
                "Contrast": (np.linspace(0.0, 0.9, num_bins), True),
                "Sharpness": (np.linspace(0.0, 0.9, num_bins), True),
            })
        return s

    def __call__(self, img):
        # img: (N, C, H, W) float32, values in [0, 1]
        img = jnp.asarray(img, jnp.float32)
        N, C, H, W = img.shape
        op_meta = self._augmentation_space(self._PARAMETER_MAX, (W, H))
        op_names = list(op_meta.keys())

        rng = random.Random(self.seed)
        key = jax.random.PRNGKey(self.seed)
        k_m, k_w = jax.random.split(key)

        # Dirichlet mixing weights (plain-JAX glue; not the hot path)
        m = jax.random.dirichlet(
            k_m, jnp.array([self.alpha, self.alpha], jnp.float32), shape=(N,))
        cw = jax.random.dirichlet(
            k_w, jnp.array([self.alpha] * self.mixture_width, jnp.float32),
            shape=(N,)) * m[:, 1:2]                              # (N, K)

        # Build the augmentation chains
        augs = []
        for _ in range(self.mixture_width):
            aug = img
            depth = self.chain_depth if self.chain_depth > 0 else rng.randint(1, 3)
            for _ in range(depth):
                op_index = rng.randrange(len(op_meta))
                op_name = op_names[op_index]
                magnitudes, signed = op_meta[op_name]
                magnitude = (float(magnitudes[rng.randrange(self.severity)])
                             if magnitudes.ndim > 0 else 0.0)
                if signed and rng.randrange(2):
                    magnitude *= -1.0
                aug = _apply_op(aug, op_name, magnitude)
            augs.append(aug)

        # Final blend: tiled, lane-dense (N*C, H*W) layout with compact
        # per-row weight vectors.  The K chains are passed as separate inputs
        # (no stacked copy).
        NC, HW = N * C, H * W
        Kw = self.mixture_width
        x2 = img.reshape(NC, HW)
        augs2 = [a.reshape(NC, HW) for a in augs]                      # K x (NC,HW)
        m0_rows = jnp.repeat(m[:, 0], C).reshape(NC, 1)
        cw_rows = jnp.repeat(jnp.transpose(cw), C, axis=1).reshape(Kw, NC, 1)

        tr, tc = _row_tile(NC), _col_tile(HW)
        img_spec = pl.BlockSpec((tr, tc), lambda i, j: (i, j))
        mix2 = pl.pallas_call(
            _make_mix_kernel(Kw),
            out_shape=jax.ShapeDtypeStruct((NC, HW), jnp.float32),
            grid=(pl.cdiv(NC, tr), pl.cdiv(HW, tc)),
            in_specs=[img_spec,
                      pl.BlockSpec((tr, 1), lambda i, j: (i, 0)),
                      pl.BlockSpec((Kw, tr, 1), lambda i, j: (0, i, 0))]
                     + [img_spec] * Kw,
            out_specs=img_spec,
            compiler_params=pltpu.CompilerParams(
                dimension_semantics=("parallel", "parallel")),
        )(x2, m0_rows, cw_rows, *augs2)
        return mix2.reshape(N, C, H, W).astype(img.dtype)


# ----------------------------------------------------------------------------
if __name__ == "__main__":
    key = jax.random.PRNGKey(0)
    x = jax.random.uniform(key, (2, 4, 16, 16), dtype=jnp.float32)  # NCHW

    augmix = AugMixPallas(severity=3, mixture_width=3, chain_depth=-1,
                          alpha=1.0, all_ops=False, seed=0)
    out = augmix(x)
    out = jax.block_until_ready(out)
    assert out.shape == x.shape and out.dtype == x.dtype
    assert bool(jnp.all(jnp.isfinite(out)))
    print("KERNEL_OK")
</pallas_src>

<mosaic_0001>
module attributes {stable_mosaic.version = 11 : i64} {
  func.func @k(%arg0: i32, %arg1: i32, %arg2: memref<8x256xf32, #tpu.memory_space<vmem>>, %arg3: memref<8x256xf32, #tpu.memory_space<vmem>>) attributes {dimension_semantics = [#tpu.dimension_semantics<parallel>, #tpu.dimension_semantics<parallel>], iteration_bounds = array<i64: 1, 1>, scalar_prefetch = 0 : i64, scratch_operands = 0 : i64, tpu.core_type = #tpu.core_type<tc>, window_params = [{transform_indices = @transform_0, window_bounds = array<i64: 8, 256>}, {transform_indices = @transform_1, window_bounds = array<i64: 8, 256>}]} {
    %c0 = arith.constant 0 : index
    %c0_0 = arith.constant 0 : index
    %0 = vector.load %arg2[%c0, %c0_0] : memref<8x256xf32, #tpu.memory_space<vmem>>, vector<8x256xf32>
    %cst = arith.constant 1.000000e+00 : f32
    %1 = vector.broadcast %cst : f32 to vector<8x256xf32>
    %2 = arith.cmpf oge, %0, %1 : vector<8x256xf32>
    %cst_1 = arith.constant 1.000000e+00 : f32
    %3 = vector.broadcast %cst_1 : f32 to vector<8x256xf32>
    %4 = arith.subf %3, %0 : vector<8x256xf32>
    %5 = arith.select %2, %4, %0 : vector<8x256xi1>, vector<8x256xf32>
    %c0_2 = arith.constant 0 : index
    %c0_3 = arith.constant 0 : index
    %6 = vector.load %arg3[%c0_2, %c0_3] : memref<8x256xf32, #tpu.memory_space<vmem>>, vector<8x256xf32>
    tpu.vector_store %arg3[%c0_2, %c0_3], %5 {strides = array<i32>} : memref<8x256xf32, #tpu.memory_space<vmem>>, vector<8x256xf32>,
    return
  }
  func.func @transform_0(%arg0: i32, %arg1: i32) -> (i32, i32) {
    %c0_i32 = arith.constant 0 : i32
    return %arg0, %arg1 : i32, i32
  }
  func.func @transform_1(%arg0: i32, %arg1: i32) -> (i32, i32) {
    %c0_i32 = arith.constant 0 : i32
    return %arg0, %arg1 : i32, i32
  }
}

</mosaic_0001>

<bundles_post_ra>
// kernel: tpu_custom_call.1
= control target key start
LH: loop header
LB: loop body
LE: loop exit
PB: predicated region body
PF: predicated region fallthrough
CT: control target
= control target key end

     0   :  { %6 = vsyncpa [#allocation3], 0  ;;  %s110_s0 = inlined_call_operand.hbm [shape: f32[8,256], index: 0, kind: input, shape index: {}]   ;;  %s111_s1 = inlined_call_operand.hbm [shape: f32[8,256], index: 1, kind: output, shape index: {}]  }
   0x1   :  { %7 = vsyncpa [#allocation4], 0  ;;  %s92_s6 = smov [#allocation2]  }
   0x2   :  { %s14_s7 = sshll.u32 %s92_s6, 4  ;;  %s15_s7 = int_to_ptr.vmem [resolvable:$true] %s14_s7 }
   0x3   :  { %s56_s8 = scalar_lea.vmem %s15_s7, 256  ;;  %p61_p1 = scmp.lt.s32.totalorder %s15_s7, %s15_s7 }
   0x4   :  { %p57_p0 = scmp.ne.s32.totalorder %s15_s7, %s56_s8  ;;  %p62_p2 = scmp.lt.s32.totalorder %s56_s8, %s56_s8 }
   0x6   :  { %p63_p3 = por %p62_p2, %p61_p1 }
   0x8   :  { %p64_p4 = pnand %p63_p3, %p57_p0 }
   0xa   :  { %67 = shalt.err (!%p64_p4)
}
   0xb   :  { %17 = dma.hbm_to_vmem [thread:$0]  %s110_s0, 256, %s15_s7, [#allocation3]  }
   0xc   :  { %88 = dma.done.wait [#allocation3], 256  }
   0xd   :  { %89 = vsyncadd [#allocation3], 4294967040  ;;  %s93_s11 = smov [#allocation5]   ;;  %v21_v0 = vld [vmem:[#allocation2] sm:$0xff]  ;;  %v22_v1 = vld [vmem:[#allocation2 + $0x8] sm:$0xff] }
   0xe   :  { %s37_s12 = sshll.u32 %s93_s11, 4  ;;  %vm23_vm0 = vcmp.ge.f32.partialorder %v21_v0, 1.0  ;;  %v25_v2 = vsub.f32 1.0, %v21_v0  ;;  %vm24_vm1 = vcmp.ge.f32.partialorder %v22_v1, 1.0  ;;  %v26_v3 = vsub.f32 1.0, %v22_v1  ;;  %s38_s12 = int_to_ptr.vmem [resolvable:$true] %s37_s12 }
   0xf   :  { %s68_s13 = scalar_lea.vmem %s38_s12, 256  ;;  %p73_p6 = scmp.lt.s32.totalorder %s38_s12, %s38_s12 }
  0x10   :  { %v27_v4 = vsel %vm23_vm0, %v25_v2, %v21_v0  ;;  %v28_v5 = vsel %vm24_vm1, %v26_v3, %v22_v1  ;;  %p69_p5 = scmp.ne.s32.totalorder %s38_s12, %s68_s13  ;;  %p74_p7 = scmp.lt.s32.totalorder %s68_s13, %s68_s13 }
  0x11   :  { %29 = vst [vmem:[#allocation5] sm:$0xff] %v27_v4  ;;  %30 = vst [vmem:[#allocation5 + $0x8] sm:$0xff] %v28_v5 }
  0x12   :  { %p75_p8 = por %p74_p7, %p73_p6 }
  0x14   :  { %p76_p9 = pnand %p75_p8, %p69_p5 }
  0x16   :  { %79 = shalt.err (!%p76_p9)
}
  0x17   :  { %40 = dma.vmem_to_hbm [thread:$0]  %s38_s12, 256, %s111_s1, [#allocation4]  }
  0x18   :  { %90 = dma.done.wait [#allocation4], 256  }
  0x19   :  { %91 = vsyncadd [#allocation4], 4294967040 }
  0x1a   :  { %44 = vsyncpa [#allocation3], 1 }
  0x1b   :  { %45 = vsyncpa [#allocation4], 1 }

</bundles_post_ra>
